<compile_context>
chip_gen: v5e
topology: v5e:2x2
jax: 0.10.0
libtpu: 0.0.40
codegen_flags: <defaults>
</compile_context>

<pallas_src>
import jax
import jax.numpy as jnp
from jax.experimental import pallas as pl
from jax.experimental.pallas import tpu as pltpu

LANE = 128             # lanes per vreg (fast axis)
MAX_BLOCK_ROWS = 4096  # 4096x128 f32 = 2 MiB/block; 2x(in+out) buffers = 8 MiB live
MAX_SWEEP_N = 32       # linear select sweep stops scaling past ~32 bins


def _round_up(a, b):
    return (a + b - 1) // b * b


def _make_h_kernel(n, use_thresholds):
    """values_ref: VMEM (n, 128) lane-broadcast bin values (whole-array resident);
       x_ref / o_ref: VMEM (block_rows, 128) tiles."""

    def kernel(values_ref, x_ref, o_ref):
        x = x_ref[...]

        # Hoist the n (1,128) value rows out of the sweep: each select reuses a
        # live, sublane-replicated vreg instead of re-splatting a scalar.
        vals = [values_ref[pl.ds(k, 1), :] for k in range(n)]

        if use_thresholds:
            # n is a power of two -> thresholds k/n are exact f32 immediates and
            # x >= k/n  <=>  clamp(trunc(x*n), 0, n-1) >= k  for x in [0, 1].
            def selected(k):
                return x >= (k / n)
        else:
            # General n: compute the bin index once (trunc toward zero, same as
            # torch .long()) and sweep integer compares for bit-exactness.
            idx = (x * float(n)).astype(jnp.int32)

            def selected(k):
                return idx >= k

        # (n-1) compares + (n-1) selects on the VPU; the >= sweep also clamps
        # out-of-range inputs to the end bins, matching the reference clamp.
        acc = jnp.broadcast_to(vals[0], x.shape)
        for k in range(1, n):
            acc = jnp.where(selected(k), vals[k], acc)
        o_ref[...] = acc.astype(o_ref.dtype)

    return kernel


def _choose_block_rows(m_rows):
    rows8 = _round_up(m_rows, 8)
    if rows8 >= 16:
        # At least two grid steps so the "parallel" axis is split across both
        # TensorCores on v7x (v5e/v6e are single-TC; harmless there).
        rows8 = _round_up(pl.cdiv(rows8, 2), 8)
    return min(MAX_BLOCK_ROWS, rows8)


def h_function(x, values):
    """out = values[clamp(int(x * n), 0, n - 1)], elementwise over any shape."""
    n = values.shape[0]
    orig_shape = x.shape
    total = x.size
    xf = x.reshape(-1)

    if total == 0:
        return jnp.zeros(orig_shape, values.dtype)

    if n > MAX_SWEEP_N:
        # TODO(synk): for large n replace this XLA gather fallback with an
        # in-kernel log2(n) bit-keyed select tree / DMA gather; the linear
        # select sweep becomes spill-bound well before n=64.
        idx = jnp.clip((xf * n).astype(jnp.int32), 0, n - 1)
        return values[idx].reshape(orig_shape)

    use_thresholds = (n & (n - 1)) == 0  # power-of-two bin count

    bulk = (total // LANE) * LANE
    pieces = []

    if bulk:
        # 128-aligned bulk: zero-copy reshape when total is a multiple of 128
        # (the common case); otherwise only a prefix slice of x (no full-tensor
        # pad, no output slice).
        x2 = (xf if bulk == total else xf[:bulk]).reshape(bulk // LANE, LANE)
        M = x2.shape[0]
        block_rows = _choose_block_rows(M)
        values_b = jnp.broadcast_to(values.reshape(n, 1), (n, LANE))

        out2 = pl.pallas_call(
            _make_h_kernel(n, use_thresholds),
            grid=(pl.cdiv(M, block_rows),),
            in_specs=[
                # whole (n,128) value table resident in VMEM (untiled)
                pl.BlockSpec(memory_space=pltpu.MemorySpace.VMEM),
                pl.BlockSpec((block_rows, LANE), lambda i: (i, 0)),
            ],
            out_specs=pl.BlockSpec((block_rows, LANE), lambda i: (i, 0)),
            out_shape=jax.ShapeDtypeStruct((M, LANE), values.dtype),
            compiler_params=pltpu.CompilerParams(
                dimension_semantics=("parallel",),  # megacore sharding on v7x
            ),
        )(values_b, x2)
        pieces.append(out2.reshape(-1))

    if bulk != total:
        # <128-element ragged tail: tiny XLA gather (cheaper than padding and
        # re-slicing the whole tensor around the kernel).
        tail_idx = jnp.clip((xf[bulk:] * n).astype(jnp.int32), 0, n - 1)
        pieces.append(values[tail_idx])

    out_flat = pieces[0] if len(pieces) == 1 else jnp.concatenate(pieces)
    return out_flat.reshape(orig_shape)


if __name__ == "__main__":
    key = jax.random.PRNGKey(0)
    k_vals, k_x = jax.random.split(key)

    n = 16
    # Deterministic "trainable" parameter vector (stand-in for torch.randn(n)).
    values = jax.random.normal(k_vals, (n,), dtype=jnp.float32)

    # Example input in [0, 1], NCHW-style shape.
    x = jax.random.uniform(k_x, (2, 4, 16, 16), dtype=jnp.float32)

    y = h_function(x, values)
    y = jax.block_until_ready(y)

    # Pure-JAX reference (PyTorch semantics: clamp(int(x*n), 0, n-1) gather).
    idx_ref = jnp.clip((x * n).astype(jnp.int32), 0, n - 1)
    y_ref = values[idx_ref]
    assert y.shape == x.shape
    assert jnp.array_equal(y, y_ref), "mismatch vs reference gather"

    print("KERNEL_OK")
</pallas_src>

<mosaic_0001>
module attributes {stable_mosaic.version = 11 : i64} {
  func.func @kernel(%arg0: i32, %arg1: memref<16x128xf32, #tpu.memory_space<vmem>>, %arg2: memref<8x128xf32, #tpu.memory_space<vmem>>, %arg3: memref<8x128xf32, #tpu.memory_space<vmem>>) attributes {dimension_semantics = [#tpu.dimension_semantics<parallel>], iteration_bounds = array<i64: 2>, scalar_prefetch = 0 : i64, scratch_operands = 0 : i64, tpu.core_type = #tpu.core_type<tc>, window_params = [{pipeline_mode = #tpu.pipeline_mode<synchronous>, transform_indices = @transform_0, window_bounds = array<i64: 16, 128>}, {transform_indices = @transform_1, window_bounds = array<i64: 8, 128>}, {transform_indices = @transform_2, window_bounds = array<i64: 8, 128>}]} {
    %c0 = arith.constant 0 : index
    %c0_0 = arith.constant 0 : index
    %0 = vector.load %arg2[%c0, %c0_0] : memref<8x128xf32, #tpu.memory_space<vmem>>, vector<8x128xf32>
    %c0_1 = arith.constant 0 : index
    %c0_2 = arith.constant 0 : index
    %1 = vector.load %arg1[%c0_1, %c0_2] : memref<16x128xf32, #tpu.memory_space<vmem>>, vector<1x128xf32>
    %c1 = arith.constant 1 : index
    %c0_3 = arith.constant 0 : index
    %2 = vector.load %arg1[%c1, %c0_3] : memref<16x128xf32, #tpu.memory_space<vmem>>, vector<1x128xf32>
    %c2 = arith.constant 2 : index
    %c0_4 = arith.constant 0 : index
    %3 = vector.load %arg1[%c2, %c0_4] : memref<16x128xf32, #tpu.memory_space<vmem>>, vector<1x128xf32>
    %c3 = arith.constant 3 : index
    %c0_5 = arith.constant 0 : index
    %4 = vector.load %arg1[%c3, %c0_5] : memref<16x128xf32, #tpu.memory_space<vmem>>, vector<1x128xf32>
    %c4 = arith.constant 4 : index
    %c0_6 = arith.constant 0 : index
    %5 = vector.load %arg1[%c4, %c0_6] : memref<16x128xf32, #tpu.memory_space<vmem>>, vector<1x128xf32>
    %c5 = arith.constant 5 : index
    %c0_7 = arith.constant 0 : index
    %6 = vector.load %arg1[%c5, %c0_7] : memref<16x128xf32, #tpu.memory_space<vmem>>, vector<1x128xf32>
    %c6 = arith.constant 6 : index
    %c0_8 = arith.constant 0 : index
    %7 = vector.load %arg1[%c6, %c0_8] : memref<16x128xf32, #tpu.memory_space<vmem>>, vector<1x128xf32>
    %c7 = arith.constant 7 : index
    %c0_9 = arith.constant 0 : index
    %8 = vector.load %arg1[%c7, %c0_9] : memref<16x128xf32, #tpu.memory_space<vmem>>, vector<1x128xf32>
    %c8 = arith.constant 8 : index
    %c0_10 = arith.constant 0 : index
    %9 = vector.load %arg1[%c8, %c0_10] : memref<16x128xf32, #tpu.memory_space<vmem>>, vector<1x128xf32>
    %c9 = arith.constant 9 : index
    %c0_11 = arith.constant 0 : index
    %10 = vector.load %arg1[%c9, %c0_11] : memref<16x128xf32, #tpu.memory_space<vmem>>, vector<1x128xf32>
    %c10 = arith.constant 10 : index
    %c0_12 = arith.constant 0 : index
    %11 = vector.load %arg1[%c10, %c0_12] : memref<16x128xf32, #tpu.memory_space<vmem>>, vector<1x128xf32>
    %c11 = arith.constant 11 : index
    %c0_13 = arith.constant 0 : index
    %12 = vector.load %arg1[%c11, %c0_13] : memref<16x128xf32, #tpu.memory_space<vmem>>, vector<1x128xf32>
    %c12 = arith.constant 12 : index
    %c0_14 = arith.constant 0 : index
    %13 = vector.load %arg1[%c12, %c0_14] : memref<16x128xf32, #tpu.memory_space<vmem>>, vector<1x128xf32>
    %c13 = arith.constant 13 : index
    %c0_15 = arith.constant 0 : index
    %14 = vector.load %arg1[%c13, %c0_15] : memref<16x128xf32, #tpu.memory_space<vmem>>, vector<1x128xf32>
    %c14 = arith.constant 14 : index
    %c0_16 = arith.constant 0 : index
    %15 = vector.load %arg1[%c14, %c0_16] : memref<16x128xf32, #tpu.memory_space<vmem>>, vector<1x128xf32>
    %c15 = arith.constant 15 : index
    %c0_17 = arith.constant 0 : index
    %16 = vector.load %arg1[%c15, %c0_17] : memref<16x128xf32, #tpu.memory_space<vmem>>, vector<1x128xf32>
    %17 = vector.shape_cast %1 : vector<1x128xf32> to vector<1x128xf32>
    %18 = vector.broadcast %17 : vector<1x128xf32> to vector<8x128xf32>
    %cst = arith.constant 6.250000e-02 : f32
    %19 = vector.broadcast %cst : f32 to vector<8x128xf32>
    %20 = arith.cmpf oge, %0, %19 : vector<8x128xf32>
    %21 = vector.shape_cast %2 : vector<1x128xf32> to vector<1x128xf32>
    %22 = vector.broadcast %21 : vector<1x128xf32> to vector<8x128xf32>
    %23 = arith.select %20, %22, %18 : vector<8x128xi1>, vector<8x128xf32>
    %cst_18 = arith.constant 1.250000e-01 : f32
    %24 = vector.broadcast %cst_18 : f32 to vector<8x128xf32>
    %25 = arith.cmpf oge, %0, %24 : vector<8x128xf32>
    %26 = vector.shape_cast %3 : vector<1x128xf32> to vector<1x128xf32>
    %27 = vector.broadcast %26 : vector<1x128xf32> to vector<8x128xf32>
    %28 = arith.select %25, %27, %23 : vector<8x128xi1>, vector<8x128xf32>
    %cst_19 = arith.constant 1.875000e-01 : f32
    %29 = vector.broadcast %cst_19 : f32 to vector<8x128xf32>
    %30 = arith.cmpf oge, %0, %29 : vector<8x128xf32>
    %31 = vector.shape_cast %4 : vector<1x128xf32> to vector<1x128xf32>
    %32 = vector.broadcast %31 : vector<1x128xf32> to vector<8x128xf32>
    %33 = arith.select %30, %32, %28 : vector<8x128xi1>, vector<8x128xf32>
    %cst_20 = arith.constant 2.500000e-01 : f32
    %34 = vector.broadcast %cst_20 : f32 to vector<8x128xf32>
    %35 = arith.cmpf oge, %0, %34 : vector<8x128xf32>
    %36 = vector.shape_cast %5 : vector<1x128xf32> to vector<1x128xf32>
    %37 = vector.broadcast %36 : vector<1x128xf32> to vector<8x128xf32>
    %38 = arith.select %35, %37, %33 : vector<8x128xi1>, vector<8x128xf32>
    %cst_21 = arith.constant 3.125000e-01 : f32
    %39 = vector.broadcast %cst_21 : f32 to vector<8x128xf32>
    %40 = arith.cmpf oge, %0, %39 : vector<8x128xf32>
    %41 = vector.shape_cast %6 : vector<1x128xf32> to vector<1x128xf32>
    %42 = vector.broadcast %41 : vector<1x128xf32> to vector<8x128xf32>
    %43 = arith.select %40, %42, %38 : vector<8x128xi1>, vector<8x128xf32>
    %cst_22 = arith.constant 3.750000e-01 : f32
    %44 = vector.broadcast %cst_22 : f32 to vector<8x128xf32>
    %45 = arith.cmpf oge, %0, %44 : vector<8x128xf32>
    %46 = vector.shape_cast %7 : vector<1x128xf32> to vector<1x128xf32>
    %47 = vector.broadcast %46 : vector<1x128xf32> to vector<8x128xf32>
    %48 = arith.select %45, %47, %43 : vector<8x128xi1>, vector<8x128xf32>
    %cst_23 = arith.constant 4.375000e-01 : f32
    %49 = vector.broadcast %cst_23 : f32 to vector<8x128xf32>
    %50 = arith.cmpf oge, %0, %49 : vector<8x128xf32>
    %51 = vector.shape_cast %8 : vector<1x128xf32> to vector<1x128xf32>
    %52 = vector.broadcast %51 : vector<1x128xf32> to vector<8x128xf32>
    %53 = arith.select %50, %52, %48 : vector<8x128xi1>, vector<8x128xf32>
    %cst_24 = arith.constant 5.000000e-01 : f32
    %54 = vector.broadcast %cst_24 : f32 to vector<8x128xf32>
    %55 = arith.cmpf oge, %0, %54 : vector<8x128xf32>
    %56 = vector.shape_cast %9 : vector<1x128xf32> to vector<1x128xf32>
    %57 = vector.broadcast %56 : vector<1x128xf32> to vector<8x128xf32>
    %58 = arith.select %55, %57, %53 : vector<8x128xi1>, vector<8x128xf32>
    %cst_25 = arith.constant 5.625000e-01 : f32
    %59 = vector.broadcast %cst_25 : f32 to vector<8x128xf32>
    %60 = arith.cmpf oge, %0, %59 : vector<8x128xf32>
    %61 = vector.shape_cast %10 : vector<1x128xf32> to vector<1x128xf32>
    %62 = vector.broadcast %61 : vector<1x128xf32> to vector<8x128xf32>
    %63 = arith.select %60, %62, %58 : vector<8x128xi1>, vector<8x128xf32>
    %cst_26 = arith.constant 6.250000e-01 : f32
    %64 = vector.broadcast %cst_26 : f32 to vector<8x128xf32>
    %65 = arith.cmpf oge, %0, %64 : vector<8x128xf32>
    %66 = vector.shape_cast %11 : vector<1x128xf32> to vector<1x128xf32>
    %67 = vector.broadcast %66 : vector<1x128xf32> to vector<8x128xf32>
    %68 = arith.select %65, %67, %63 : vector<8x128xi1>, vector<8x128xf32>
    %cst_27 = arith.constant 6.875000e-01 : f32
    %69 = vector.broadcast %cst_27 : f32 to vector<8x128xf32>
    %70 = arith.cmpf oge, %0, %69 : vector<8x128xf32>
    %71 = vector.shape_cast %12 : vector<1x128xf32> to vector<1x128xf32>
    %72 = vector.broadcast %71 : vector<1x128xf32> to vector<8x128xf32>
    %73 = arith.select %70, %72, %68 : vector<8x128xi1>, vector<8x128xf32>
    %cst_28 = arith.constant 7.500000e-01 : f32
    %74 = vector.broadcast %cst_28 : f32 to vector<8x128xf32>
    %75 = arith.cmpf oge, %0, %74 : vector<8x128xf32>
    %76 = vector.shape_cast %13 : vector<1x128xf32> to vector<1x128xf32>
    %77 = vector.broadcast %76 : vector<1x128xf32> to vector<8x128xf32>
    %78 = arith.select %75, %77, %73 : vector<8x128xi1>, vector<8x128xf32>
    %cst_29 = arith.constant 8.125000e-01 : f32
    %79 = vector.broadcast %cst_29 : f32 to vector<8x128xf32>
    %80 = arith.cmpf oge, %0, %79 : vector<8x128xf32>
    %81 = vector.shape_cast %14 : vector<1x128xf32> to vector<1x128xf32>
    %82 = vector.broadcast %81 : vector<1x128xf32> to vector<8x128xf32>
    %83 = arith.select %80, %82, %78 : vector<8x128xi1>, vector<8x128xf32>
    %cst_30 = arith.constant 8.750000e-01 : f32
    %84 = vector.broadcast %cst_30 : f32 to vector<8x128xf32>
    %85 = arith.cmpf oge, %0, %84 : vector<8x128xf32>
    %86 = vector.shape_cast %15 : vector<1x128xf32> to vector<1x128xf32>
    %87 = vector.broadcast %86 : vector<1x128xf32> to vector<8x128xf32>
    %88 = arith.select %85, %87, %83 : vector<8x128xi1>, vector<8x128xf32>
    %cst_31 = arith.constant 9.375000e-01 : f32
    %89 = vector.broadcast %cst_31 : f32 to vector<8x128xf32>
    %90 = arith.cmpf oge, %0, %89 : vector<8x128xf32>
    %91 = vector.shape_cast %16 : vector<1x128xf32> to vector<1x128xf32>
    %92 = vector.broadcast %91 : vector<1x128xf32> to vector<8x128xf32>
    %93 = arith.select %90, %92, %88 : vector<8x128xi1>, vector<8x128xf32>
    %c0_32 = arith.constant 0 : index
    %c0_33 = arith.constant 0 : index
    %94 = vector.load %arg3[%c0_32, %c0_33] : memref<8x128xf32, #tpu.memory_space<vmem>>, vector<8x128xf32>
    tpu.vector_store %arg3[%c0_32, %c0_33], %93 {strides = array<i32>} : memref<8x128xf32, #tpu.memory_space<vmem>>, vector<8x128xf32>,
    return
  }
  func.func @transform_0(%arg0: i32) -> (i32, i32) {
    %c0_i32 = arith.constant 0 : i32
    %c0_i32_0 = arith.constant 0 : i32
    %c0_i32_1 = arith.constant 0 : i32
    return %c0_i32, %c0_i32_0 : i32, i32
  }
  func.func @transform_1(%arg0: i32) -> (i32, i32) {
    %c0_i32 = arith.constant 0 : i32
    %c0_i32_0 = arith.constant 0 : i32
    return %arg0, %c0_i32 : i32, i32
  }
  func.func @transform_2(%arg0: i32) -> (i32, i32) {
    %c0_i32 = arith.constant 0 : i32
    %c0_i32_0 = arith.constant 0 : i32
    return %arg0, %c0_i32 : i32, i32
  }
}

</mosaic_0001>

<bundles_post_ra>
// kernel: tpu_custom_call.1
= control target key start
LH: loop header
LB: loop body
LE: loop exit
PB: predicated region body
PF: predicated region fallthrough
CT: control target
= control target key end

     0   :  { %7 = vsyncpa [#allocation3], 0  ;;  %s719_s0 = inlined_call_operand.hbm [shape: f32[16,128], index: 0, kind: input, shape index: {}]   ;;  %s720_s1 = inlined_call_operand.hbm [shape: f32[16,128], index: 1, kind: input, shape index: {}]   ;;  %s721_s2 = inlined_call_operand.hbm [shape: f32[16,128], index: 2, kind: output, shape index: {}]  }
   0x1   :  { %8 = vsyncpa [#allocation6], 0 }
   0x2   :  { %10 = vsyncpa [#allocation6 + $0x1], 0 }
   0x3   :  { %11 = vsyncpa [#allocation4], 0 }
   0x4   :  { %13 = vsyncpa [#allocation4 + $0x1], 0  ;;  %s579_s9 = smov 0   ;;  %s581_s10 = smov 0  }
   0x5   :  { %s583_s11 = smov 0   ;;  %s585_s12 = smov 0  }
   0x6 LB: > { %s108_s15 = sshll.u32 %s719_s0, 4  ;;  %s603_s16 = sadd.s32 4294967295, %s559_s12   ;;  %s559_s12 = sphi %s585_s12, %s731_s12   ;;  %s555_s11 = sphi %s583_s11, %s730_s11   ;;  %s551_s10 = sphi %s581_s10, %s729_s10   ;;  %s547_s9 = sphi %s579_s9, %s728_s9   ;;  %s109_s15 = int_to_ptr.hbm [resolvable:$true] %s108_s15 }
   0x7   : > { %p341_p0 = scmp.ge.s32.totalorder %s559_s12, 1  ;;  %p61_p1 = scmp.eq.s32.totalorder %s603_s16, 0 }
   0x8   : > { %p97_p2 = scmp.lt.s32.totalorder %s559_s12, 3  ;;  %s561_s18 = smov [#allocation2]  }
   0x9   : > { %s110_s19 = sshll.u32 %s561_s18, 4  ;;  %s562_s20 = smov 128   ;;  %s111_s19 = int_to_ptr.vmem [resolvable:$true] %s110_s19 }
   0xa   : > { %p608_p3 = pnand %p341_p0, %p97_p2  ;;  %s563_s21 = smov 8  }
   0xb   : > { %s340_s22 = sadd.s32 4294967294, %s559_s12   ;;  %s619_s23 = sadd.s32 1, %s559_s12  }
   0xc   : > { %p362_p4 = pneg %p608_p3  ;;  %s47_s24 = sadd.s32 1, %s555_s11 }
   0xd   : > { %s44_s25 = ssub.s32 %s559_s12, %s619_s23  ;;  %p54_p7 = scmp.ne.s32.totalorder %s555_s11, %s551_s10 }
   0xe   : > { %p363_p6 = pnand %p362_p4, %p61_p1  ;;  %p45_p8 = scmp.eq.s32.totalorder %s44_s25, 0 }
   0xf   : > { %p55_p9 = scmp.eq.s32.totalorder %s559_s12, 0  ;;  %p60_p10 = scmp.ne.s32.totalorder %s551_s10, %s547_s9 }
  0x10   : > { %365 = dma.hbm_to_vmem [thread:$0]  (!%p363_p6), %s109_s15, 256, %s111_s19, [#allocation3], %s562_s20, %s562_s20, %s563_s21  }
  0x11   : > { %p84_p11 = scmp.eq.s32.totalorder %s603_s16, 1  ;;  %p635_p12 = por %p61_p1, %p60_p10 }
  0x12   : > { %s631_s26 = scalar_select %p45_p8, %s555_s11, %s47_s24  }
  0x13   : > { %p639_p13 = por %p84_p11, %p54_p7  ;;  %p90_p0 = scmp.eq.s32.totalorder %s340_s22, 1 }
  0x14   : > { %p56_p2 = por %p55_p9, %p54_p7  ;;  %s124_s29 = sand.u32 1, %s555_s11  }
  0x15   : > { %p644_p4 = por %p90_p0, %p60_p10  ;;  %p375_p6 = scmp.lt.s32.totalorder %s559_s12, 2 }
  0x16   : > { %s344_s3 = sshll.u32 %s124_s29, 3  ;;  %s345_s4 = sshll.u32 %s559_s12, 3 }
  0x17   : > { %s132_s7 = scalar_lea.hbm %s720_s1, %s345_s4  ;;  %s128_s13 = scalar_lea.vmem [#allocation5], %s344_s3 }
  0x18   : > { %s134_s8 = sshll.u32 %s132_s7, 4  ;;  %s136_s14 = sshll.u32 %s128_s13, 4  ;;  %s135_s8 = int_to_ptr.hbm [resolvable:$true] %s134_s8  ;;  %s137_s14 = int_to_ptr.vmem [resolvable:$true] %s136_s14 }
  0x19   : > { %p653_p8 = pnand %p375_p6, %p56_p2  ;;  %s125_s18 = scalar_lea.sflag [#allocation6], %s124_s29 }
  0x1a   : > { %s459_s19 = sshra.s32 %s135_s8, 4  ;;  %s466_s24 = scalar_lea.hbm %s720_s1, 16  ;;  %s460_s19 = int_to_ptr.hbm [resolvable:$true] %s459_s19 }
  0x1b   : > { %s461_s20 = scalar_lea.hbm %s460_s19, 8  ;;  %p463_p9 = pneg %p653_p8 }
  0x1c   : > { %p462_p7 = scmp.ne.s32.totalorder %s460_s19, %s461_s20  ;;  %p467_p0 = scmp.lt.s32.totalorder %s460_s19, %s720_s1 }
  0x1d   : > { %p468_p2 = scmp.lt.s32.totalorder %s466_s24, %s461_s20 }
  0x1e   : > { %p464_p10 = pnand %p463_p9, %p462_p7 }
  0x1f   : > { %p469_p6 = por %p468_p2, %p467_p0 }
  0x20   : > { %p465_p11 = pneg %p464_p10 }
  0x22   : > { %p470_p5 = pnand %p469_p6, %p465_p11 }
  0x24   : > { %473 = shalt.err (!%p470_p5)
}
  0x25   : > { %369 = dma.hbm_to_vmem [thread:$0]  (!%p653_p8), %s135_s8, 128, %s137_s14, %s125_s18  }
  0x26   : > { %145 = sbr.rel (%p608_p3) target bundleno = 69 (0x45), region = 28 }
  0x2b   : > { %534 = dma.done.wait (%p61_p1), [#allocation3], 256  }
  0x2c   : > { %536 = vsyncadd (%p61_p1), [#allocation3], 4294967040  ;;  %s674_s29 = sand.u32 1, %s551_s10  }
  0x2d   : > { %s348_s4 = sshll.u32 %s674_s29, 3  ;;  %s153_s5 = scalar_lea.sflag [#allocation6], %s674_s29 }
  0x2e   : > { %s156_s6 = scalar_lea.vmem [#allocation5], %s348_s4 }
  0x2f   : > { %538 = dma.done.wait (%p635_p12), %s153_s5, 128  }
  0x30   : > { %540 = vsyncadd (%p635_p12), %s153_s5, 4294967168  ;;  %v178_v0 = vld [vmem:[%s156_s6] sm:$0xff]  ;;  %v413_v1 = vld [vmem:[#allocation2] ss:$0 sm:$0xff]  ;;  %s351_s17 = sshll.u32 %s603_s16, 3  ;;  %s177_s16 = scalar_lea.vmem [#allocation7], %s348_s4 }
  0x31   : > { %vm196_vm0 = vcmp.ge.f32.partialorder %v178_v0, 0.0625  ;;  %v414_v2 = vld [vmem:[#allocation2 + $0x1] ss:$0 sm:$0xff]  ;;  %vm199_vm1 = vcmp.ge.f32.partialorder %v178_v0, 0.125  ;;  %v415_v3 = vld [vmem:[#allocation2 + $0x2] ss:$0 sm:$0xff]  ;;  %s253_s8 = scalar_lea.hbm %s721_s2, %s351_s17 }
  0x32   : > { %vm202_vm2 = vcmp.ge.f32.partialorder %v178_v0, 0.1875  ;;  %v416_v4 = vld [vmem:[#allocation2 + $0x3] ss:$0 sm:$0xff]  ;;  %v417_v5 = vld [vmem:[#allocation2 + $0x4] ss:$0 sm:$0xff]  ;;  %v198_v6 = vsel %vm196_vm0, %v414_v2, %v413_v1  ;;  %vm205_vm3 = vcmp.ge.f32.partialorder %v178_v0, 0.25 }
  0x33   : > { %v418_v7 = vld [vmem:[#allocation2 + $0x5] ss:$0 sm:$0xff]  ;;  %v201_v8 = vsel %vm199_vm1, %v415_v3, %v198_v6  ;;  %vm208_vm4 = vcmp.ge.f32.partialorder %v178_v0, 0.3125  ;;  %v419_v9 = vld [vmem:[#allocation2 + $0x6] ss:$0 sm:$0xff]  ;;  %vm211_vm5 = vcmp.ge.f32.partialorder %v178_v0, 0.375 }
  0x34   : > { %v204_v10 = vsel %vm202_vm2, %v416_v4, %v201_v8  ;;  %v420_v11 = vld [vmem:[#allocation2 + $0x7] ss:$0 sm:$0xff]  ;;  %vm214_vm6 = vcmp.ge.f32.partialorder %v178_v0, 0.4375  ;;  %v421_v13 = vld [vmem:[#allocation2 + $0x8] ss:$0 sm:$0xff]  ;;  %vm217_vm7 = vcmp.ge.f32.partialorder %v178_v0, 0.5 }
  0x35   : > { %v207_v12 = vsel %vm205_vm3, %v417_v5, %v204_v10  ;;  %v422_v15 = vld [vmem:[#allocation2 + $0x9] ss:$0 sm:$0xff]  ;;  %vm220_vm8 = vcmp.ge.f32.partialorder %v178_v0, 0.5625  ;;  %v423_v17 = vld [vmem:[#allocation2 + $0xa] ss:$0 sm:$0xff]  ;;  %vm223_vm9 = vcmp.ge.f32.partialorder %v178_v0, 0.625 }
  0x36   : > { %v210_v14 = vsel %vm208_vm4, %v418_v7, %v207_v12  ;;  %v424_v19 = vld [vmem:[#allocation2 + $0xb] ss:$0 sm:$0xff]  ;;  %vm226_vm10 = vcmp.ge.f32.partialorder %v178_v0, 0.6875  ;;  %v425_v21 = vld [vmem:[#allocation2 + $0xc] ss:$0 sm:$0xff]  ;;  %vm229_vm11 = vcmp.ge.f32.partialorder %v178_v0, 0.75 }
  0x37   : > { %v213_v16 = vsel %vm211_vm5, %v419_v9, %v210_v14  ;;  %v426_v23 = vld [vmem:[#allocation2 + $0xd] ss:$0 sm:$0xff]  ;;  %vm232_vm12 = vcmp.ge.f32.partialorder %v178_v0, 0.8125  ;;  %v427_v25 = vld [vmem:[#allocation2 + $0xe] ss:$0 sm:$0xff]  ;;  %vm235_vm13 = vcmp.ge.f32.partialorder %v178_v0, 0.875 }
  0x38   : > { %v216_v18 = vsel %vm214_vm6, %v420_v11, %v213_v16  ;;  %v428_v27 = vld [vmem:[#allocation2 + $0xf] ss:$0 sm:$0xff]  ;;  %s255_s13 = sshll.u32 %s177_s16, 4  ;;  %s257_s14 = sshll.u32 %s253_s8, 4  ;;  %vm238_vm14 = vcmp.ge.f32.partialorder %v178_v0, 0.9375  ;;  %s256_s13 = int_to_ptr.vmem [resolvable:$true] %s255_s13  ;;  %s258_s14 = int_to_ptr.hbm [resolvable:$true] %s257_s14 }
  0x39   : > { %v219_v20 = vsel %vm217_vm7, %v421_v13, %v216_v18  ;;  %s243_s15 = scalar_lea.sflag [#allocation4], %s674_s29  ;;  %s503_s18 = sshra.s32 %s258_s14, 4  ;;  %s504_s18 = int_to_ptr.hbm [resolvable:$true] %s503_s18 }
  0x3a   : > { %v222_v22 = vsel %vm220_vm8, %v422_v15, %v219_v20  ;;  %s505_s19 = scalar_lea.hbm %s504_s18, 8  ;;  %s509_s22 = scalar_lea.hbm %s721_s2, 16 }
  0x3b   : > { %v225_v24 = vsel %vm223_vm9, %v423_v17, %v222_v22  ;;  %p506_p1 = scmp.ne.s32.totalorder %s504_s18, %s505_s19  ;;  %p510_p12 = scmp.lt.s32.totalorder %s504_s18, %s721_s2 }
  0x3c   : > { %v228_v26 = vsel %vm226_vm10, %v424_v19, %v225_v24  ;;  %p511_p8 = scmp.lt.s32.totalorder %s509_s22, %s505_s19 }
  0x3d   : > { %v231_v28 = vsel %vm229_vm11, %v425_v21, %v228_v26  ;;  %p507_p3 = pnand %p506_p1, %p639_p13 }
  0x3e   : > { %v234_v29 = vsel %vm232_vm12, %v426_v23, %v231_v28  ;;  %p512_p7 = por %p511_p8, %p510_p12 }
  0x3f   : > { %v237_v30 = vsel %vm235_vm13, %v427_v25, %v234_v29  ;;  %p508_p5 = pneg %p507_p3 }
  0x40   : > { %v240_v31 = vsel %vm238_vm14, %v428_v27, %v237_v30 }
  0x41   : > { %241 = vst [vmem:[%s177_s16] sm:$0xff] %v240_v31  ;;  %p513_p9 = pnand %p512_p7, %p508_p5 }
  0x43   : > { %516 = shalt.err (!%p513_p9)
}
  0x44   : > { %360 = dma.vmem_to_hbm [thread:$0]  (%p639_p13), %s256_s13, 128, %s258_s14, %s243_s15  }
  0x45 PF: > { %s269_s3 = sand.u32 1, %s547_s9   ;;  %p727_p10 = scmp.ge.s32.totalorder %s559_s12, 2 }
  0x46   : > { %s270_s29 = scalar_lea.sflag [#allocation4], %s269_s3 }
  0x47   : > { %p371_p11 = pnand %p727_p10, %p644_p4 }
  0x49   : > { %p372_p0 = pneg %p371_p11 }
  0x4b   : > { %542 = dma.done.wait (%p372_p0), %s270_s29, 128  }
  0x4c   : > { %544 = vsyncadd (%p372_p0), %s270_s29, 4294967168  ;;  %p16_p2 = scmp.ge.s32.totalorder %s619_s23, 4   ;;  %s728_s9 = smov %s551_s10 }
  0x4d   : > { %s729_s10 = smov %s555_s11  ;;  %s730_s11 = smov %s631_s26 }
  0x4e   : > { %s731_s12 = smov %s619_s23  ;;  %18 = sbr.rel (!%p16_p2) target bundleno = 6 (0x6), region = 78 }
  0x53   :  { %276 = vsyncpa [#allocation3], 1 }
  0x54   :  { %278 = vsyncpa [#allocation3 + $0x1], 1 }
  0x55   :  { %279 = vsyncpa [#allocation6], 1 }
  0x56   :  { %281 = vsyncpa [#allocation6 + $0x1], 1 }
  0x57   :  { %282 = vsyncpa [#allocation4], 1 }
  0x58   :  { %284 = vsyncpa [#allocation4 + $0x1], 1 }

</bundles_post_ra>
